<compile_context>
chip_gen: v5e
topology: v5e:2x2
jax: 0.10.0
libtpu: 0.0.40
codegen_flags: <defaults>
</compile_context>

<pallas_src>
import numpy as np
import jax
import jax.numpy as jnp
from jax.experimental import pallas as pl
from jax.experimental.pallas import tpu as pltpu

# ------------------------------- sizes --------------------------------------
BATCH = 8                       # one full sublane tile
INP_DIM = 8                     # base_model input size
R_DIM = 16                      # read vector fed to the memory nodes
NUM_MEM = 3                     # number of nodes in ex_memory
STATE_DIM = 8                   # per-node state size
S_TOT = NUM_MEM * STATE_DIM     # 24
ERR_DIM = 1
LSTM_IN = S_TOT + ERR_DIM       # Controller's LSTMCell input_size (25)
HIDDEN = 32                     # hidden_size -> 4*H == 128 (lane dense)
LANES = 128

# packed activation lane layout ------------------------------------------------
#   x (per step):   inp 0:8 | r 8:24 | err 24 | 1.0 bias 25 | zeros
#   carry / output: states 0:24 | h 32:64 | c 96:128 | zeros
ERR_LANE = S_TOT                # 24
BIAS_LANE = S_TOT + 1           # 25
H_OFF = 32
C_OFF = 96

# permuted gate layout: z is 256 lanes = [zA | zB] with
#   zA: g @ 32:64, f @ 96:128        zB: o @ 32:64, i @ 96:128
# chosen so the LSTM cell needs only 64-lane (half-vreg) rotations.
W_A_COLS = 128 + 256            # [memory-preact block | partial-z block]
W_B_COLS = 256
W_COLS = W_A_COLS + W_B_COLS    # 640


# --------------------------- fused sequence kernel ---------------------------
def _controller_seq_kernel(x_ref, hc0_ref, w_ref, out_ref, hc_ref):
    t = pl.program_id(0)

    @pl.when(t == 0)
    def _init():
        hc_ref[...] = hc0_ref[...]          # load initial (h, c) into the carry

    x = x_ref[0]                            # (B, 128): inp|r|err|bias lanes
    carry = hc_ref[...]                     # (B, 128): h @ 32:64, c @ 96:128
    x_full = x + carry                      # disjoint lanes -> cheap "concat"

    wa = w_ref[:, 0:W_A_COLS]               # (128, 384)
    wb = w_ref[:, W_A_COLS:W_COLS]          # (128, 256)

    # ---- matmul A: memory-node preacts + error/bias/h contributions to z ----
    # TODO(synk): base_model / ex_memory are externally loaded checkpoints whose
    # architecture is unspecified in the reference code; linear+tanh stand-in.
    t1 = jnp.dot(x_full, wa, preferred_element_type=jnp.float32)   # (B, 384)
    states_vreg = jnp.tanh(t1[:, 0:LANES])      # lanes 0:24 = states, rest = 0
    partial_z = t1[:, LANES:W_A_COLS]           # (B, 256), permuted gate layout

    # ---- matmul B: states @ W_ih (permuted) -> full gate pre-activations ----
    z = jnp.dot(states_vreg, wb, preferred_element_type=jnp.float32) + partial_z
    z_a = z[:, 0:LANES]                         # g @ 32:64, f @ 96:128
    z_b = z[:, LANES:2 * LANES]                 # o @ 32:64, i @ 96:128

    sig_a = jax.nn.sigmoid(z_a)                 # f gate @ 96:128
    sig_b = jax.nn.sigmoid(z_b)                 # o gate @ 32:64, i gate @ 96:128
    tanh_a = jnp.tanh(z_a)                      # g gate @ 32:64

    # c' = f*c + i*g   (valid at lanes 96:128; roll by 64 is direction-agnostic)
    c_new = sig_a * carry + sig_b * pltpu.roll(tanh_a, 64, axis=1)
    # h' = o * tanh(c')   (valid at lanes 32:64)
    h_new = sig_b * pltpu.roll(jnp.tanh(c_new), 64, axis=1)

    lane = jax.lax.broadcasted_iota(jnp.int32, (BATCH, LANES), 1)
    carry_new = jnp.where(lane >= C_OFF, c_new,
                          jnp.where((lane >= H_OFF) & (lane < H_OFF + HIDDEN),
                                    h_new, 0.0))
    hc_ref[...] = carry_new                     # h/c live in VMEM across steps
    out_ref[0] = states_vreg + carry_new        # ONE full-tile lane-dense store


# ------------------------------ JAX wrappers ---------------------------------
def _pack_inputs(inp_seq, err_seq, r_seq):
    """(T,B,8),(T,B,1),(T,B,16) -> (T,B,128) [inp | r | err | 1.0 | zeros]."""
    T = inp_seq.shape[0]
    x = jnp.zeros((T, BATCH, LANES), jnp.float32)
    x = x.at[:, :, 0:INP_DIM].set(inp_seq)
    x = x.at[:, :, INP_DIM:INP_DIM + R_DIM].set(r_seq)
    x = x.at[:, :, ERR_LANE:ERR_LANE + ERR_DIM].set(err_seq)
    x = x.at[:, :, BIAS_LANE].set(1.0)
    return x


def _pack_state(h, c):
    hc = jnp.zeros((BATCH, LANES), jnp.float32)
    hc = hc.at[:, H_OFF:H_OFF + HIDDEN].set(h)
    hc = hc.at[:, C_OFF:C_OFF + HIDDEN].set(c)
    return hc


@jax.jit
def controller_sequence_forward(w_slab, xs, prev_state):
    """Run T Controller.forward steps in ONE pallas_call (grid=(T,), h/c carried
    in VMEM scratch, weights DMA'd once). Returns (states_seq, h_seq, c_seq)."""
    inp_seq, err_seq, r_seq = xs
    h0, c0 = prev_state
    x_packed = _pack_inputs(inp_seq, err_seq, r_seq)
    hc0 = _pack_state(h0, c0)
    T = x_packed.shape[0]

    out = pl.pallas_call(
        _controller_seq_kernel,
        out_shape=jax.ShapeDtypeStruct((T, BATCH, LANES), jnp.float32),
        grid=(T,),
        in_specs=[
            pl.BlockSpec((1, BATCH, LANES), lambda t: (t, 0, 0)),   # per-step acts
            pl.BlockSpec((BATCH, LANES), lambda t: (0, 0)),         # initial (h,c)
            pl.BlockSpec((LANES, W_COLS), lambda t: (0, 0)),        # resident weights
        ],
        out_specs=pl.BlockSpec((1, BATCH, LANES), lambda t: (t, 0, 0)),
        scratch_shapes=[pltpu.VMEM((BATCH, LANES), jnp.float32)],   # (h,c) carry
        compiler_params=pltpu.CompilerParams(
            dimension_semantics=("arbitrary",),        # sequential recurrence
            vmem_limit_bytes=4 * 1024 * 1024),
    )(x_packed, hc0, w_slab)

    states_seq = out[:, :, 0:S_TOT]
    h_seq = out[:, :, H_OFF:H_OFF + HIDDEN]
    c_seq = out[:, :, C_OFF:C_OFF + HIDDEN]
    return states_seq, h_seq, c_seq


def controller_forward(w_slab, x, prev_state):
    """Exact mirror of Controller.forward(x, prev_state) -> (states, h, (h, c))."""
    inp, error, r = x
    states_seq, h_seq, c_seq = controller_sequence_forward(
        w_slab, (inp[None], error[None], r[None]), prev_state)
    states_flat = states_seq[0]
    states = [states_flat[:, k * STATE_DIM:(k + 1) * STATE_DIM]
              for k in range(NUM_MEM)]
    return states, h_seq[0], (h_seq[0], c_seq[0])


# ---------------------------- parameter setup ---------------------------------
def build_params(key):
    ks = jax.random.split(key, 7)

    def lin(k, shape, scale=0.1):
        return (scale * jax.random.normal(k, shape)).astype(jnp.float32)

    # stacked stand-in external-memory node weights (see TODO in kernel)
    w_mem_inp = lin(ks[0], (INP_DIM, S_TOT))
    w_mem_r = lin(ks[1], (R_DIM, S_TOT))
    b_mem = lin(ks[2], (1, S_TOT))

    # torch.nn.LSTMCell(LSTM_IN, HIDDEN) weights, stored transposed (row-vector
    # convention); PyTorch's two biases are summed: b = b_ih + b_hh.
    w_ih = lin(ks[3], (LSTM_IN, 4 * HIDDEN))
    w_hh = lin(ks[4], (HIDDEN, 4 * HIDDEN))
    b_ih = lin(ks[5], (1, 4 * HIDDEN))
    b_hh = lin(ks[6], (1, 4 * HIDDEN))

    return dict(
        w_mem_inp=w_mem_inp, w_mem_r=w_mem_r, b_mem=b_mem,
        w_ih_s=w_ih[:S_TOT, :],             # rows hit by the memory states
        w_ih_e=w_ih[S_TOT:S_TOT + 1, :],    # row hit by the error column
        w_hh=w_hh, b_lstm=b_ih + b_hh,
    )


def _permute_gate_cols(w):
    """Torch gate order [i|f|g|o] (4H=128 cols) -> 256-wide permuted layout:
       i -> 224:256, f -> 96:128, g -> 32:64, o -> 160:192 (rest zero)."""
    w = np.asarray(w, np.float32)
    out = np.zeros((w.shape[0], 2 * LANES), np.float32)
    out[:, 224:256] = w[:, 0 * HIDDEN:1 * HIDDEN]   # i
    out[:, 96:128] = w[:, 1 * HIDDEN:2 * HIDDEN]    # f
    out[:, 32:64] = w[:, 2 * HIDDEN:3 * HIDDEN]     # g
    out[:, 160:192] = w[:, 3 * HIDDEN:4 * HIDDEN]   # o
    return out


def pack_weights(params):
    """Pack all 7 weight tensors into ONE (128, 640) f32 slab.
       cols   0:384  "A": x_full(B,128) @ A -> [mem preact (0:24) | partial z (128:384)]
       cols 384:640  "B": states(B,128) @ B -> states@W_ih part of z
       Biases ride on the constant-1.0 bias lane of x, the error column of W_ih on
       the error lane, and W_hh on the h lanes of the carry (free lane-dense fold)."""
    w = np.zeros((LANES, W_COLS), np.float32)
    # memory-node projection + its bias  (A block, cols 0:24)
    w[0:INP_DIM, 0:S_TOT] = np.asarray(params['w_mem_inp'])
    w[INP_DIM:INP_DIM + R_DIM, 0:S_TOT] = np.asarray(params['w_mem_r'])
    w[BIAS_LANE, 0:S_TOT] = np.asarray(params['b_mem'])[0]
    # partial-z block (A block, cols 128:384), permuted gate layout
    z0 = LANES
    w[ERR_LANE, z0:z0 + 2 * LANES] = _permute_gate_cols(params['w_ih_e'])[0]
    w[BIAS_LANE, z0:z0 + 2 * LANES] = _permute_gate_cols(params['b_lstm'])[0]
    w[H_OFF:H_OFF + HIDDEN, z0:z0 + 2 * LANES] = _permute_gate_cols(params['w_hh'])
    # B block (cols 384:640): states @ w_ih_s, permuted
    w[0:S_TOT, W_A_COLS:W_COLS] = _permute_gate_cols(params['w_ih_s'])
    return jnp.asarray(w)


# -------------------------- pure-JAX reference --------------------------------
def controller_reference(params, x, prev_state):
    inp, error, r = x
    h, c = prev_state
    hi = jax.lax.Precision.HIGHEST
    states_flat = jnp.tanh(jnp.dot(inp, params['w_mem_inp'], precision=hi)
                           + jnp.dot(r, params['w_mem_r'], precision=hi)
                           + params['b_mem'])
    w_ih = jnp.concatenate([params['w_ih_s'], params['w_ih_e']], axis=0)
    xin = jnp.concatenate([states_flat, error], axis=1)
    z = (jnp.dot(xin, w_ih, precision=hi)
         + jnp.dot(h, params['w_hh'], precision=hi) + params['b_lstm'])
    H = HIDDEN
    i = jax.nn.sigmoid(z[:, :H])
    f = jax.nn.sigmoid(z[:, H:2 * H])
    g = jnp.tanh(z[:, 2 * H:3 * H])
    o = jax.nn.sigmoid(z[:, 3 * H:])
    c_new = f * c + i * g
    h_new = o * jnp.tanh(c_new)
    states = [states_flat[:, k * STATE_DIM:(k + 1) * STATE_DIM]
              for k in range(NUM_MEM)]
    return states, h_new, (h_new, c_new)


# ---------------------------------- main --------------------------------------
if __name__ == "__main__":
    key = jax.random.PRNGKey(0)
    params = build_params(key)
    w_slab = pack_weights(params)

    T = 8
    k1, k2, k3 = jax.random.split(jax.random.fold_in(key, 1), 3)
    inp_seq = jax.random.normal(k1, (T, BATCH, INP_DIM), jnp.float32)
    err_seq = jax.random.normal(k2, (T, BATCH, ERR_DIM), jnp.float32)
    r_seq = jax.random.normal(k3, (T, BATCH, R_DIM), jnp.float32)
    h0 = jnp.zeros((BATCH, HIDDEN), jnp.float32)
    c0 = jnp.zeros((BATCH, HIDDEN), jnp.float32)

    # (1) full recurrent rollout inside one pallas_call
    states_seq, h_seq, c_seq = controller_sequence_forward(
        w_slab, (inp_seq, err_seq, r_seq), (h0, c0))

    # (2) single-step path mirroring Controller.forward, fed back once
    x0 = (inp_seq[0], err_seq[0], r_seq[0])
    x1 = (inp_seq[1], err_seq[1], r_seq[1])
    states1, h1, state1 = controller_forward(w_slab, x0, (h0, c0))
    states2, h2, state2 = controller_forward(w_slab, x1, state1)
    jax.block_until_ready((states_seq, h_seq, c_seq, h1, h2))

    # shape contract of Controller.forward
    assert len(states1) == NUM_MEM
    assert all(s.shape == (BATCH, STATE_DIM) for s in states1)
    assert h1.shape == (BATCH, HIDDEN)
    assert state1[0].shape == (BATCH, HIDDEN) and state1[1].shape == (BATCH, HIDDEN)

    # numerical checks vs the pure-JAX (Precision.HIGHEST) reference.
    # MXU default-precision matmuls over T recurrent steps -> loose-ish tolerance.
    TOL = 2e-2

    def check(a, b, name):
        a = np.asarray(a); b = np.asarray(b)
        assert np.allclose(a, b, atol=TOL, rtol=TOL), (name, float(np.max(np.abs(a - b))))

    h_r, c_r = h0, c0
    for t in range(T):
        st_r, h_r, (_, c_r) = controller_reference(
            params, (inp_seq[t], err_seq[t], r_seq[t]), (h_r, c_r))
        check(states_seq[t], jnp.concatenate(st_r, axis=1), f"states[{t}]")
        check(h_seq[t], h_r, f"h[{t}]")
        check(c_seq[t], c_r, f"c[{t}]")

    # single-step wrapper: step 0 from the zero state; step 1 from the kernel's
    # own returned state (isolates one-step error)
    st_r0, h_r0, s_r0 = controller_reference(params, x0, (h0, c0))
    check(jnp.concatenate(states1, axis=1), jnp.concatenate(st_r0, axis=1), "step0 states")
    check(h1, h_r0, "step0 h")
    check(state1[1], s_r0[1], "step0 c")
    st_r1, h_r1, s_r1 = controller_reference(params, x1, state1)
    check(h2, h_r1, "step1 h")
    check(state2[1], s_r1[1], "step1 c")

    print("KERNEL_OK")
</pallas_src>

<mosaic_0001>
module attributes {stable_mosaic.version = 11 : i64} {
  func.func @_controller_seq_kernel(%arg0: i32, %arg1: memref<1x8x128xf32, #tpu.memory_space<vmem>>, %arg2: memref<8x128xf32, #tpu.memory_space<vmem>>, %arg3: memref<128x640xf32, #tpu.memory_space<vmem>>, %arg4: memref<1x8x128xf32, #tpu.memory_space<vmem>>, %arg5: memref<8x128xf32, #tpu.memory_space<vmem>>) attributes {dimension_semantics = [#tpu.dimension_semantics<arbitrary>], iteration_bounds = array<i64: 8>, scalar_prefetch = 0 : i64, scratch_operands = 1 : i64, tpu.core_type = #tpu.core_type<tc>, window_params = [{transform_indices = @transform_0, window_bounds = array<i64: 1, 8, 128>}, {pipeline_mode = #tpu.pipeline_mode<synchronous>, transform_indices = @transform_1, window_bounds = array<i64: 8, 128>}, {pipeline_mode = #tpu.pipeline_mode<synchronous>, transform_indices = @transform_2, window_bounds = array<i64: 128, 640>}, {transform_indices = @transform_3, window_bounds = array<i64: 1, 8, 128>}]} {
    %c0_i32 = arith.constant 0 : i32
    %0 = arith.cmpi eq, %arg0, %c0_i32 : i32
    %1 = arith.extui %0 : i1 to i32
    %c0_i32_0 = arith.constant 0 : i32
    %2 = arith.cmpi ne, %1, %c0_i32_0 : i32
    scf.if %2 {
      %c0_19 = arith.constant 0 : index
      %c0_20 = arith.constant 0 : index
      %51 = vector.load %arg2[%c0_19, %c0_20] : memref<8x128xf32, #tpu.memory_space<vmem>>, vector<8x128xf32>
      %c0_21 = arith.constant 0 : index
      %c0_22 = arith.constant 0 : index
      %52 = vector.load %arg5[%c0_21, %c0_22] : memref<8x128xf32, #tpu.memory_space<vmem>>, vector<8x128xf32>
      tpu.vector_store %arg5[%c0_21, %c0_22], %51 {strides = array<i32>} : memref<8x128xf32, #tpu.memory_space<vmem>>, vector<8x128xf32>,
    } else {
    }
    %c0 = arith.constant 0 : index
    %c0_1 = arith.constant 0 : index
    %c0_2 = arith.constant 0 : index
    %3 = vector.load %arg1[%c0, %c0_1, %c0_2] : memref<1x8x128xf32, #tpu.memory_space<vmem>>, vector<1x8x128xf32>
    %4 = vector.shape_cast %3 : vector<1x8x128xf32> to vector<8x128xf32>
    %c0_3 = arith.constant 0 : index
    %c0_4 = arith.constant 0 : index
    %5 = vector.load %arg5[%c0_3, %c0_4] : memref<8x128xf32, #tpu.memory_space<vmem>>, vector<8x128xf32>
    %6 = arith.addf %4, %5 : vector<8x128xf32>
    %c0_5 = arith.constant 0 : index
    %c0_6 = arith.constant 0 : index
    %7 = vector.load %arg3[%c0_5, %c0_6] : memref<128x640xf32, #tpu.memory_space<vmem>>, vector<128x384xf32>
    %c0_7 = arith.constant 0 : index
    %c384 = arith.constant 384 : index
    %8 = vector.load %arg3[%c0_7, %c384] : memref<128x640xf32, #tpu.memory_space<vmem>>, vector<128x256xf32>
    %cst = arith.constant dense<0.000000e+00> : vector<8x384xf32>
    %9 = tpu.matmul %6, %7, %cst {dimension_numbers = #tpu.dot_dimension_numbers<[1], [0], [0], [1], [0, 0, 1, 1], [], []>} : vector<8x128xf32>, vector<128x384xf32>, vector<8x384xf32> -> vector<8x384xf32>
    %10 = vector.extract_strided_slice %9 {offsets = [0, 0], sizes = [8, 128], strides = [1, 1]} : vector<8x384xf32> to vector<8x128xf32>
    %11 = math.tanh %10 : vector<8x128xf32>
    %12 = vector.extract_strided_slice %9 {offsets = [0, 128], sizes = [8, 256], strides = [1, 1]} : vector<8x384xf32> to vector<8x256xf32>
    %cst_8 = arith.constant dense<0.000000e+00> : vector<8x256xf32>
    %13 = tpu.matmul %11, %8, %cst_8 {dimension_numbers = #tpu.dot_dimension_numbers<[1], [0], [0], [1], [0, 0, 1, 1], [], []>} : vector<8x128xf32>, vector<128x256xf32>, vector<8x256xf32> -> vector<8x256xf32>
    %14 = arith.addf %13, %12 : vector<8x256xf32>
    %15 = vector.extract_strided_slice %14 {offsets = [0, 0], sizes = [8, 128], strides = [1, 1]} : vector<8x256xf32> to vector<8x128xf32>
    %16 = vector.extract_strided_slice %14 {offsets = [0, 128], sizes = [8, 128], strides = [1, 1]} : vector<8x256xf32> to vector<8x128xf32>
    %17 = arith.negf %15 : vector<8x128xf32>
    %18 = math.exp %17 : vector<8x128xf32>
    %cst_9 = arith.constant 1.000000e+00 : f32
    %19 = vector.broadcast %cst_9 : f32 to vector<8x128xf32>
    %20 = arith.addf %19, %18 : vector<8x128xf32>
    %21 = arith.divf %19, %20 : vector<8x128xf32>
    %22 = arith.negf %16 : vector<8x128xf32>
    %23 = math.exp %22 : vector<8x128xf32>
    %cst_10 = arith.constant 1.000000e+00 : f32
    %24 = vector.broadcast %cst_10 : f32 to vector<8x128xf32>
    %25 = arith.addf %24, %23 : vector<8x128xf32>
    %26 = arith.divf %24, %25 : vector<8x128xf32>
    %27 = math.tanh %15 : vector<8x128xf32>
    %28 = arith.mulf %21, %5 : vector<8x128xf32>
    %c64_i32 = arith.constant 64 : i32
    %29 = tpu.dynamic_rotate %27 by %c64_i32 dim 1 : vector<8x128xf32>, i32 -> vector<8x128xf32>
    %30 = arith.mulf %26, %29 : vector<8x128xf32>
    %31 = arith.addf %28, %30 : vector<8x128xf32>
    %32 = math.tanh %31 : vector<8x128xf32>
    %c64_i32_11 = arith.constant 64 : i32
    %33 = tpu.dynamic_rotate %32 by %c64_i32_11 dim 1 : vector<8x128xf32>, i32 -> vector<8x128xf32>
    %34 = arith.mulf %26, %33 : vector<8x128xf32>
    %35 = tpu.iota {dimensions = array<i32: 1>} : vector<8x128xi32>
    %c96_i32 = arith.constant 96 : i32
    %36 = vector.broadcast %c96_i32 : i32 to vector<8x128xi32>
    %37 = arith.cmpi sge, %35, %36 : vector<8x128xi32>
    %c32_i32 = arith.constant 32 : i32
    %38 = vector.broadcast %c32_i32 : i32 to vector<8x128xi32>
    %39 = arith.cmpi sge, %35, %38 : vector<8x128xi32>
    %c64_i32_12 = arith.constant 64 : i32
    %40 = vector.broadcast %c64_i32_12 : i32 to vector<8x128xi32>
    %41 = arith.cmpi slt, %35, %40 : vector<8x128xi32>
    %42 = arith.andi %39, %41 : vector<8x128xi1>
    %cst_13 = arith.constant 0.000000e+00 : f32
    %43 = vector.broadcast %cst_13 : f32 to vector<8x128xf32>
    %44 = arith.select %42, %34, %43 : vector<8x128xi1>, vector<8x128xf32>
    %45 = arith.select %37, %31, %44 : vector<8x128xi1>, vector<8x128xf32>
    %c0_14 = arith.constant 0 : index
    %c0_15 = arith.constant 0 : index
    %46 = vector.load %arg5[%c0_14, %c0_15] : memref<8x128xf32, #tpu.memory_space<vmem>>, vector<8x128xf32>
    tpu.vector_store %arg5[%c0_14, %c0_15], %45 {strides = array<i32>} : memref<8x128xf32, #tpu.memory_space<vmem>>, vector<8x128xf32>,
    %47 = arith.addf %11, %45 : vector<8x128xf32>
    %c0_16 = arith.constant 0 : index
    %c0_17 = arith.constant 0 : index
    %c0_18 = arith.constant 0 : index
    %48 = vector.load %arg4[%c0_16, %c0_17, %c0_18] : memref<1x8x128xf32, #tpu.memory_space<vmem>>, vector<1x8x128xf32>
    %49 = vector.shape_cast %48 : vector<1x8x128xf32> to vector<8x128xf32>
    %50 = vector.shape_cast %47 : vector<8x128xf32> to vector<1x8x128xf32>
    tpu.vector_store %arg4[%c0_16, %c0_17, %c0_18], %50 {strides = array<i32>} : memref<1x8x128xf32, #tpu.memory_space<vmem>>, vector<1x8x128xf32>,
    return
  }
  func.func @transform_0(%arg0: i32) -> (i32, i32, i32) {
    %c0_i32 = arith.constant 0 : i32
    %c0_i32_0 = arith.constant 0 : i32
    %c0_i32_1 = arith.constant 0 : i32
    return %arg0, %c0_i32, %c0_i32_0 : i32, i32, i32
  }
  func.func @transform_1(%arg0: i32) -> (i32, i32) {
    %c0_i32 = arith.constant 0 : i32
    %c0_i32_0 = arith.constant 0 : i32
    %c0_i32_1 = arith.constant 0 : i32
    return %c0_i32, %c0_i32_0 : i32, i32
  }
  func.func @transform_2(%arg0: i32) -> (i32, i32) {
    %c0_i32 = arith.constant 0 : i32
    %c0_i32_0 = arith.constant 0 : i32
    %c0_i32_1 = arith.constant 0 : i32
    return %c0_i32, %c0_i32_0 : i32, i32
  }
  func.func @transform_3(%arg0: i32) -> (i32, i32, i32) {
    %c0_i32 = arith.constant 0 : i32
    %c0_i32_0 = arith.constant 0 : i32
    %c0_i32_1 = arith.constant 0 : i32
    return %arg0, %c0_i32, %c0_i32_0 : i32, i32, i32
  }
}

</mosaic_0001>

<bundles_post_ra>
// kernel: controller_sequence_forward.1
= control target key start
LH: loop header
LB: loop body
LE: loop exit
PB: predicated region body
PF: predicated region fallthrough
CT: control target
= control target key end

     0   :  { %8 = vsyncpa [#allocation4], 0  ;;  %s613_s12 = smov 0   ;;  %s659_s0 = inlined_call_operand.vmem [shape: f32[8,8,128], index: 0, kind: input, shape index: {}]   ;;  %s660_s1 = inlined_call_operand.vmem [shape: f32[8,128], index: 1, kind: input, shape index: {}]   ;;  %s661_s2 = inlined_call_operand.hbm [shape: f32[128,640], index: 2, kind: input, shape index: {}]   ;;  %s662_s3 = inlined_call_operand.vmem [shape: f32[8,8,128], index: 3, kind: output, shape index: {}]  }
   0x1 LB: > { %s127_s15 = sshll.u32 %s661_s2, 4  ;;  %s497_s16 = sadd.s32 4294967295, %s587_s12   ;;  %s587_s12 = sphi %s613_s12, %s14_s12   ;;  %s128_s15 = int_to_ptr.hbm [resolvable:$true] %s127_s15 }
   0x2   : > { %p499_p0 = scmp.ge.s32.totalorder %s587_s12, 1  ;;  %p113_p1 = scmp.lt.s32.totalorder %s587_s12, 9 }
   0x3   : > { %p500_p2 = scmp.ne.s32.totalorder %s497_s16, 0  ;;  %p519_p3 = scmp.eq.s32.totalorder %s497_s16, 0 }
   0x4   : > { %p114_p4 = pnand %p499_p0, %p113_p1  ;;  %s589_s17 = smov [#allocation3]  }
   0x5   : > { %s129_s18 = sshll.u32 %s589_s17, 4  ;;  %s590_s19 = smov 640   ;;  %s130_s18 = int_to_ptr.vmem [resolvable:$true] %s129_s18 }
   0x6   : > { %p515_p5 = pneg %p114_p4  ;;  %s591_s20 = smov 40  }
   0x7   : > { %152 = sbr.rel (%p114_p4) target bundleno = 575 (0x23f), region = 32 }
   0x8   : > { %p516_p6 = pnand %p519_p3, %p515_p5 }
   0xa   : > { %518 = dma.hbm_to_vmem [thread:$0]  (!%p516_p6), %s128_s15, 10240, %s130_s18, [#allocation4], %s590_s19, %s590_s19, %s591_s20  }
   0xc   : > { %582 = dma.done.wait (%p519_p3), [#allocation4], 10240  }
   0xd   : > { %584 = vsyncadd (%p519_p3), [#allocation4], 4294957056  ;;  %p175_p7 = scmp.lt.s32.totalorder %s497_s16, 7 }
   0xe   : > { %186 = sbr.rel (%p500_p2) target bundleno = 21 (0x15), region = 40 }
   0xf   : > { %s176_s21 = scalar_select %p175_p7, %s497_s16, 7 }
  0x11   : > { %s504_s22 = sshll.u32 %s176_s21, 3 }
  0x12   : > { %s627_s25 = scalar_lea.vmem %s659_s0, %s504_s22  ;;  %s632_s28 = scalar_lea.vmem %s662_s3, %s504_s22 }
  0x13   : > { %v187_v0 = vld [vmem:[%s660_s1] sm:$0xff] }
  0x14   : > { %188 = vst [vmem:[#allocation2] sm:$0xff] %v187_v0 }
  0x15 PF: > { %v237_v1 = vld [vmem:[#allocation3 + $0x258] sm:$0xff]  ;;  %v234_v2 = vld [vmem:[#allocation3 + $0x230] sm:$0xff]  ;;  %v231_v3 = vld [vmem:[#allocation3 + $0x208] sm:$0xff]  ;;  %s592_s4 = smov 64  }
  0x16   : > { %272 = vmatpush.msra.mxu0 %v237_v1  ;;  %v228_v4 = vld [vmem:[#allocation3 + $0x1e0] sm:$0xff]  ;;  %v225_v5 = vld [vmem:[#allocation3 + $0x1b8] sm:$0xff]  ;;  %v239_v6 = vld [vmem:[#allocation3 + $0x268] sm:$0xff] }
  0x17   : > { %v236_v7 = vld [vmem:[#allocation3 + $0x240] sm:$0xff]  ;;  %312 = vmatpush.msra.mxu2 %v239_v6  ;;  %v270_v8 = vld [vmem:[#allocation3 + $0x270] sm:$0xff]  ;;  %v233_v10 = vld [vmem:[#allocation3 + $0x218] sm:$0xff] }
  0x18   : > { %273 = vmatpush.msra.mxu0 %v234_v2  ;;  %v222_v9 = vld [vmem:[#allocation3 + $0x190] sm:$0xff]  ;;  %333 = vmatpush.msra.mxu3 %v270_v8  ;;  %v268_v11 = vld [vmem:[#allocation3 + $0x248] sm:$0xff]  ;;  %v266_v12 = vld [vmem:[#allocation3 + $0x220] sm:$0xff] }
  0x19   : > { %313 = vmatpush.msra.mxu2 %v236_v7  ;;  %v219_v13 = vld [vmem:[#allocation3 + $0x168] sm:$0xff]  ;;  %v230_v14 = vld [vmem:[#allocation3 + $0x1f0] sm:$0xff]  ;;  %v238_v15 = vld [vmem:[#allocation3 + $0x260] sm:$0xff] }
  0x1a   : > { %274 = vmatpush.msra.mxu0 %v231_v3  ;;  %334 = vmatpush.msra.mxu3 %v268_v11  ;;  %v264_v16 = vld [vmem:[#allocation3 + $0x1f8] sm:$0xff]  ;;  %v216_v18 = vld [vmem:[#allocation3 + $0x140] sm:$0xff]  ;;  %v227_v19 = vld [vmem:[#allocation3 + $0x1c8] sm:$0xff] }
  0x1b   : > { %314 = vmatpush.msra.mxu2 %v233_v10  ;;  %v235_v17 = vld [vmem:[#allocation3 + $0x238] sm:$0xff]  ;;  %292 = vmatpush.msra.mxu1 %v238_v15  ;;  %v262_v20 = vld [vmem:[#allocation3 + $0x1d0] sm:$0xff]  ;;  %v224_v23 = vld [vmem:[#allocation3 + $0x1a0] sm:$0xff] }
  0x1c   : > { %275 = vmatpush.msra.mxu0 %v228_v4  ;;  %335 = vmatpush.msra.mxu3 %v266_v12  ;;  %v232_v21 = vld [vmem:[#allocation3 + $0x210] sm:$0xff]  ;;  %v213_v22 = vld [vmem:[#allocation3 + $0x118] sm:$0xff]  ;;  %v260_v24 = vld [vmem:[#allocation3 + $0x1a8] sm:$0xff] }
  0x1d   : > { %315 = vmatpush.msra.mxu2 %v230_v14  ;;  %293 = vmatpush.msra.mxu1 %v235_v17  ;;  %v229_v25 = vld [vmem:[#allocation3 + $0x1e8] sm:$0xff]  ;;  %v210_v26 = vld [vmem:[#allocation3 + $0xf0] sm:$0xff]  ;;  %v221_v27 = vld [vmem:[#allocation3 + $0x178] sm:$0xff] }
  0x1e   : > { %276 = vmatpush.msra.mxu0 %v225_v5  ;;  %336 = vmatpush.msra.mxu3 %v264_v16  ;;  %v258_v28 = vld [vmem:[#allocation3 + $0x180] sm:$0xff]  ;;  %v207_v30 = vld [vmem:[#allocation3 + $0xc8] sm:$0xff]  ;;  %v218_v31 = vld [vmem:[#allocation3 + $0x150] sm:$0xff] }
  0x1f   : > { %316 = vmatpush.msra.mxu2 %v227_v19  ;;  %294 = vmatpush.msra.mxu1 %v232_v21  ;;  %v226_v29 = vld [vmem:[#allocation3 + $0x1c0] sm:$0xff]  ;;  %v256_v32 = vld [vmem:[#allocation3 + $0x158] sm:$0xff]  ;;  %v215_v35 = vld [vmem:[#allocation3 + $0x128] sm:$0xff] }
  0x20   : > { %277 = vmatpush.msra.mxu0 %v222_v9  ;;  %337 = vmatpush.msra.mxu3 %v262_v20  ;;  %v223_v33 = vld [vmem:[#allocation3 + $0x198] sm:$0xff]  ;;  %v204_v34 = vld [vmem:[#allocation3 + $0xa0] sm:$0xff]  ;;  %v254_v36 = vld [vmem:[#allocation3 + $0x130] sm:$0xff] }
  0x21   : > { %317 = vmatpush.msra.mxu2 %v224_v23  ;;  %295 = vmatpush.msra.mxu1 %v229_v25  ;;  %v220_v37 = vld [vmem:[#allocation3 + $0x170] sm:$0xff]  ;;  %v201_v38 = vld [vmem:[#allocation3 + $0x78] sm:$0xff]  ;;  %v212_v39 = vld [vmem:[#allocation3 + $0x100] sm:$0xff] }
  0x22   : > { %278 = vmatpush.msra.mxu0 %v219_v13  ;;  %338 = vmatpush.msra.mxu3 %v260_v24  ;;  %v252_v40 = vld [vmem:[#allocation3 + $0x108] sm:$0xff]  ;;  %v198_v42 = vld [vmem:[#allocation3 + $0x50] sm:$0xff]  ;;  %v189_v43 = vld [vmem:[%s627_s25] sm:$0xff] }
  0x23   : > { %318 = vmatpush.msra.mxu2 %v221_v27  ;;  %296 = vmatpush.msra.mxu1 %v226_v29  ;;  %v217_v41 = vld [vmem:[#allocation3 + $0x148] sm:$0xff]  ;;  %v209_v44 = vld [vmem:[#allocation3 + $0xd8] sm:$0xff]  ;;  %v250_v46 = vld [vmem:[#allocation3 + $0xe0] sm:$0xff] }
  0x24   : > { %279 = vmatpush.msra.mxu0 %v216_v18  ;;  %339 = vmatpush.msra.mxu3 %v258_v28  ;;  %v639_v45 = vld [vmem:[#allocation2] sm:$0xff]  ;;  %v214_v47 = vld [vmem:[#allocation3 + $0x120] sm:$0xff]  ;;  %v195_v48 = vld [vmem:[#allocation3 + $0x28] sm:$0xff] }
  0x25   : > { %319 = vmatpush.msra.mxu2 %v218_v31  ;;  %297 = vmatpush.msra.mxu1 %v223_v33  ;;  %v206_v49 = vld [vmem:[#allocation3 + $0xb0] sm:$0xff]  ;;  %v248_v50 = vld [vmem:[#allocation3 + $0xb8] sm:$0xff]  ;;  %v192_v51 = vld [vmem:[#allocation3] sm:$0xff]  ;;  %v642_v52 = vadd.f32 %v639_v45, %v189_v43 }
  0x26   : > { %280 = vmatpush.msra.mxu0 %v213_v22  ;;  %340 = vmatpush.msra.mxu3 %v256_v32  ;;  %v203_v53 = vld [vmem:[#allocation3 + $0x88] sm:$0xff]  ;;  %v271_v54 = vld [vmem:[#allocation3 + $0x278] sm:$0xff]  ;;  %v200_v55 = vld [vmem:[#allocation3 + $0x60] sm:$0xff] }
  0x27   : > { %320 = vmatpush.msra.mxu2 %v215_v35  ;;  %298 = vmatpush.msra.mxu1 %v220_v37  ;;  %v269_v56 = vld [vmem:[#allocation3 + $0x250] sm:$0xff]  ;;  %v197_v57 = vld [vmem:[#allocation3 + $0x38] sm:$0xff]  ;;  %v267_v58 = vld [vmem:[#allocation3 + $0x228] sm:$0xff] }
  0x28   : > { %281 = vmatpush.msra.mxu0 %v210_v26  ;;  %341 = vmatpush.msra.mxu3 %v254_v36  ;;  %v265_v59 = vld [vmem:[#allocation3 + $0x200] sm:$0xff]  ;;  %v263_v60 = vld [vmem:[#allocation3 + $0x1d8] sm:$0xff]  ;;  %v261_v61 = vld [vmem:[#allocation3 + $0x1b0] sm:$0xff] }
  0x29   : > { %321 = vmatpush.msra.mxu2 %v212_v39  ;;  %299 = vmatpush.msra.mxu1 %v217_v41  ;;  %v259_v62 = vld [vmem:[#allocation3 + $0x188] sm:$0xff]  ;;  %v257_v63 = vld [vmem:[#allocation3 + $0x160] sm:$0xff]  ;;  %v255_v0 = vld [vmem:[#allocation3 + $0x138] sm:$0xff] }
  0x2a   : > { %282 = vmatpush.msra.mxu0 %v207_v30  ;;  %342 = vmatpush.msra.mxu3 %v252_v40  ;;  %v253_v1 = vld [vmem:[#allocation3 + $0x110] sm:$0xff]  ;;  %v251_v2 = vld [vmem:[#allocation3 + $0xe8] sm:$0xff]  ;;  %v249_v3 = vld [vmem:[#allocation3 + $0xc0] sm:$0xff] }
  0x2b   : > { %322 = vmatpush.msra.mxu2 %v209_v44  ;;  %300 = vmatpush.msra.mxu1 %v214_v47  ;;  %v211_v4 = vld [vmem:[#allocation3 + $0xf8] sm:$0xff]  ;;  %v194_v5 = vld [vmem:[#allocation3 + $0x10] sm:$0xff]  ;;  %v244_v9 = vld [vmem:[#allocation3 + $0x68] sm:$0xff] }
  0x2c   : > { %283 = vmatpush.msra.mxu0 %v204_v34  ;;  %343 = vmatpush.msra.mxu3 %v250_v46  ;;  %v246_v6 = vld [vmem:[#allocation3 + $0x90] sm:$0xff]  ;;  %v247_v7 = vld [vmem:[#allocation3 + $0x98] sm:$0xff]  ;;  %v205_v11 = vld [vmem:[#allocation3 + $0xa8] sm:$0xff] }
  0x2d   : > { %323 = vmatpush.msra.mxu2 %v206_v49  ;;  %301 = vmatpush.msra.mxu1 %v211_v4  ;;  %v208_v8 = vld [vmem:[#allocation3 + $0xd0] sm:$0xff]  ;;  %v242_v12 = vld [vmem:[#allocation3 + $0x40] sm:$0xff]  ;;  %v243_v13 = vld [vmem:[#allocation3 + $0x48] sm:$0xff] }
  0x2e   : > { %284 = vmatpush.msra.mxu0 %v201_v38  ;;  %344 = vmatpush.msra.mxu3 %v248_v50  ;;  %v245_v10 = vld [vmem:[#allocation3 + $0x70] sm:$0xff]  ;;  %v202_v14 = vld [vmem:[#allocation3 + $0x80] sm:$0xff]  ;;  %v240_v15 = vld [vmem:[#allocation3 + $0x18] sm:$0xff] }
  0x2f   : > { %324 = vmatpush.msra.mxu2 %v203_v53  ;;  %302 = vmatpush.msra.mxu1 %v208_v8  ;;  %v241_v16 = vld [vmem:[#allocation3 + $0x20] sm:$0xff]  ;;  %v199_v17 = vld [vmem:[#allocation3 + $0x58] sm:$0xff]  ;;  %v196_v18 = vld [vmem:[#allocation3 + $0x30] sm:$0xff] }
  0x30   : > { %285 = vmatpush.msra.mxu0 %v198_v42  ;;  %345 = vmatpush.msra.mxu3 %v246_v6  ;;  %v193_v19 = vld [vmem:[#allocation3 + $0x8] sm:$0xff] }
  0x31   : > { %325 = vmatpush.msra.mxu2 %v200_v55  ;;  %303 = vmatpush.msra.mxu1 %v205_v11 }
  0x32   : > { %286 = vmatpush.msra.mxu0 %v195_v48  ;;  %346 = vmatpush.msra.mxu3 %v244_v9 }
  0x33   : > { %326 = vmatpush.msra.mxu2 %v197_v57  ;;  %304 = vmatpush.msra.mxu1 %v202_v14 }
  0x34   : > { %287 = vmatpush.msra.mxu0 %v192_v51  ;;  %347 = vmatpush.msra.mxu3 %v242_v12 }
  0x35   : > { %288 = vmatmul.f32.vlgmr.msra.gmra.mxu0 %v642_v52  ;;  %327 = vmatpush.msra.mxu2 %v194_v5 }
  0x36   : > { %353 = vmatpush.msrb.mxu0 %v271_v54  ;;  %328 = vmatmul.f32.vlgmr.msra.gmra.mxu2 %v642_v52 }
  0x37   : > { %348 = vmatpush.msra.mxu3 %v240_v15  ;;  %305 = vmatpush.msra.mxu1 %v199_v17 }
  0x38   : > { %354 = vmatpush.msrb.mxu0 %v269_v56 }
  0x39   : > { %306 = vmatpush.msra.mxu1 %v196_v18 }
  0x3a   : > { %355 = vmatpush.msrb.mxu0 %v267_v58 }
  0x3b   : > { %307 = vmatpush.msra.mxu1 %v193_v19 }
  0x3c   : > { %356 = vmatpush.msrb.mxu0 %v265_v59  ;;  %308 = vmatmul.f32.vlgmr.msra.gmra.mxu1 %v642_v52 }
  0x3e   : > { %357 = vmatpush.msrb.mxu0 %v263_v60 }
  0x40   : > { %358 = vmatpush.msrb.mxu0 %v261_v61  ;;  %v421_v61 = vlaneseq }
  0x42   : > { %359 = vmatpush.msrb.mxu0 %v259_v62  ;;  %v422_v62 = vand.u32 127, %v421_v61 }
  0x44   : > { %360 = vmatpush.msrb.mxu0 %v257_v63  ;;  %vm424_vm8 = vcmp.ge.s32.totalorder %v422_v62, 32  ;;  %vm425_vm9 = vcmp.lt.s32.totalorder %v422_v62, 64  ;;  %vm423_vm11 = vcmp.ge.s32.totalorder %v422_v62, 96 }
  0x45   : > { %vm426_vm10 = vmand %vm424_vm8, %vm425_vm9 }
  0x46   : > { %361 = vmatpush.msrb.mxu0 %v255_v0 }
  0x48   : > { %362 = vmatpush.msrb.mxu0 %v253_v1 }
  0x4a   : > { %363 = vmatpush.msrb.mxu0 %v251_v2 }
  0x4c   : > { %364 = vmatpush.msrb.mxu0 %v249_v3 }
  0x4e   : > { %365 = vmatpush.msrb.mxu0 %v247_v7 }
  0x50   : > { %366 = vmatpush.msrb.mxu0 %v245_v10 }
  0x52   : > { %367 = vmatpush.msrb.mxu0 %v243_v13 }
  0x54   : > { %368 = vmatpush.msrb.mxu0 %v241_v16 }
  0xb2   : > { %v289_v20 = vpop.f32.mrf.mxu0 }
  0xb3   : > { %533 = vtanh.f32 %v289_v20 }
  0xb9   : > { %v647_v21 = vpop.eup %533  ;;  %v309_v22 = vpop.f32.mrf.mxu1 }
  0xba   : > { %349 = vmatmul.f32.vlgmr.msra.gmra.mxu3 %v647_v21  ;;  %369 = vmatmul.f32.vlgmr.msrb.gmra.mxu0 %v647_v21  ;;  %v329_v26 = vpop.f32.mrf.mxu2 }
 0x137   : > { %v370_v27 = vpop.f32.mrf.mxu0 }
 0x138   : > { %v371_v28 = vadd.f32 %v370_v27, %v329_v26 }
 0x13a   : > { %v508_v30 = vmul.f32 -1.442695, %v371_v28 }
 0x13d   : > { %v350_v23 = vpop.f32.mrf.mxu3 }
 0x13e   : > { %v351_v24 = vadd.f32 %v350_v23, %v309_v22 }
 0x140   : > { %535 = vtanh.f32 %v351_v24  ;;  %v507_v29 = vmul.f32 -1.442695, %v351_v24 }
 0x142   : > { %537 = vpow2.f32 %v507_v29 }
 0x143   : > { %539 = vpow2.f32 %v508_v30 }
 0x146   : > { %v536_v25 = vpop.eup %535 }
 0x147   : > { %413 = vrot.lane.b32.xlu0 %v536_v25, %s592_s4 }
 0x148   : > { %v538_v31 = vpop.eup %537 }
 0x149   : > { %v540_v32 = vpop.eup %539  ;;  %v376_v33 = vadd.f32 1.0, %v538_v31 }
 0x14a   : > { %v395_v34 = vadd.f32 1.0, %v540_v32 }
 0x14b   : > { %541 = vrcp.f32 %v376_v33  ;;  %v388_v44 = vand.u32 2147483648, %v376_v33  ;;  %vm382_vm2 = vweird.f32 %v376_v33  ;;  %v386_v47 = vand.u32 2147483647, %v376_v33 }
 0x14c   : > { %543 = vrcp.f32 %v395_v34  ;;  %v407_v48 = vand.u32 2147483648, %v395_v34  ;;  %vm401_vm4 = vweird.f32 %v395_v34  ;;  %v405_v49 = vand.u32 2147483647, %v395_v34 }
 0x14d   : > { %v389_v51 = vor.u32 1.1754944e-38, %v388_v44  ;;  %vm387_vm6 = vcmp.eq.f32.partialorder %v386_v47, 8.507059e+37 }
 0x14e   : > { %v408_v53 = vor.u32 1.1754944e-38, %v407_v48  ;;  %vm406_vm7 = vcmp.eq.f32.partialorder %v405_v49, 8.507059e+37 }
 0x151   : > { %v542_v35 = vpop.eup %541 }
 0x152   : > { %v544_v36 = vpop.eup %543  ;;  %v378_v37 = vmul.f32 %v542_v35, %v376_v33  ;;  %vm383_vm0 = vweird.f32 %v542_v35 }
 0x153   : > { %v397_v38 = vmul.f32 %v544_v36, %v395_v34  ;;  %vm402_vm1 = vweird.f32 %v544_v36  ;;  %vm384_vm3 = vmor %vm382_vm2, %vm383_vm0 }
 0x154   : > { %v379_v39 = vsub.f32 1.0, %v378_v37  ;;  %vm403_vm5 = vmor %vm401_vm4, %vm402_vm1 }
 0x155   : > { %v398_v40 = vsub.f32 1.0, %v397_v38 }
 0x156   : > { %v380_v41 = vmul.f32 %v542_v35, %v379_v39 }
 0x157   : > { %v399_v42 = vmul.f32 %v544_v36, %v398_v40 }
 0x158   : > { %v381_v43 = vadd.f32 %v542_v35, %v380_v41 }
 0x159   : > { %v400_v46 = vadd.f32 %v544_v36, %v399_v42 }
 0x15a   : > { %v385_v50 = vsel %vm384_vm3, %v542_v35, %v381_v43 }
 0x15b   : > { %v404_v52 = vsel %vm403_vm5, %v544_v36, %v400_v46  ;;  %v390_v54 = vsel %vm387_vm6, %v389_v51, %v385_v50 }
 0x15c   : > { %v409_v55 = vsel %vm406_vm7, %v408_v53, %v404_v52  ;;  %v412_v57 = vmul.f32 %v390_v54, %v639_v45 }
 0x1b9   : > { %v414_v56 = vpop.permute.xlu0 %413 }
 0x1ba   : > { %v415_v58 = vmul.f32 %v414_v56, %v409_v55 }
 0x1bc   : > { %v416_v59 = vadd.f32 %v415_v58, %v412_v57 }
 0x1be   : > { %545 = vtanh.f32 %v416_v59 }
 0x1c4   : > { %v546_v60 = vpop.eup %545 }
 0x1c5   : > { %418 = vrot.lane.b32.xlu0 %v546_v60, %s592_s4 }
 0x237   : > { %v419_v63 = vpop.permute.xlu0 %418 }
 0x238   : > { %v420_v0 = vmul.f32 %v419_v63, %v409_v55 }
 0x23a   : > { %v427_v1 = vsel %vm426_vm10, %v420_v0, 0.0 }
 0x23b   : > { %v428_v2 = vsel %vm423_vm11, %v416_v59, %v427_v1 }
 0x23c   : > { %429 = vst [vmem:[#allocation2] sm:$0xff] %v428_v2  ;;  %v430_v45 = vadd.f32 %v647_v21, %v428_v2 }
 0x23e   : > { %431 = vst [vmem:[%s632_s28] sm:$0xff] %v430_v45 }
 0x23f PF: > { %s14_s12 = sadd.s32 1, %s587_s12  }
 0x240   : > { %p11_p8 = scmp.ge.s32.totalorder %s14_s12, 10  }
 0x242   :  { %13 = sbr.rel (!%p11_p8) target bundleno = 1 (0x1), region = 71 }
 0x247   :  { %451 = vsyncpa [#allocation4], 1 }
 0x248   :  { %453 = vsyncpa [#allocation4 + $0x1], 1 }

</bundles_post_ra>
